<compile_context>
chip_gen: v6e
topology: v6e:2x2x1
jax: 0.10.0
libtpu: 0.0.40
codegen_flags: <defaults>
</compile_context>

<pallas_src>
import jax
import jax.numpy as jnp
from jax.experimental import pallas as pl
from jax.experimental.pallas import tpu as pltpu


# ----------------------------------------------------------------------------
# Kernel body (shared by both paths; scale/shift broadcast against the x block)
# ----------------------------------------------------------------------------
def _bn_affine_kernel(x_ref, scale_ref, shift_ref, o_ref):
    x = x_ref[...].astype(jnp.float32)            # fp16/bf16 -> fp32 upcast
    y = x * scale_ref[...] + shift_ref[...]       # (bc,1) or (1,tl) broadcast
    o_ref[...] = y.astype(o_ref.dtype)            # cast back to input dtype


# ----------------------------------------------------------------------------
# Tile-selection helpers (pure Python, trace time)
# ----------------------------------------------------------------------------
def _round_down(x, m):
    return (x // m) * m


def _round_up(x, m):
    return -(-x // m) * m


def _largest_128_divisor(L, cap):
    """Largest d with d % 128 == 0, d | L, d <= cap. 0 if none. (L % 128 == 0)"""
    m = L // 128
    cap_units = cap // 128
    best = 0
    i = 1
    while i * i <= m:
        if m % i == 0:
            for d in (i, m // i):
                if d <= cap_units and d > best:
                    best = d
        i += 1
    return best * 128


def _pick_lane_tile(L, cap):
    """Lane tile: full extent if it fits the byte budget, else a 128-multiple
    tile (preferring one that divides L so tail blocks stay >= ~50% full)."""
    if L <= cap:
        return L                                   # full extent: always legal
    if L % 128 == 0:
        d = _largest_128_divisor(L, cap)
        if d >= cap // 2:
            return d
    return max(128, _round_down(cap, 128))         # ragged tail block is masked


def _pick_row_tile(R, max_rows):
    if R <= max_rows:
        return R                                   # full extent: always legal
    return max(8, _round_down(max_rows, 8))        # fill sublanes


def _ensure_multi_step(R, L, bc, tl):
    """If the whole array fits a single block, split one parallel axis so the
    grid has >= 2 steps and v7x megacore shards work across both TensorCores."""
    if pl.cdiv(R, bc) * pl.cdiv(L, tl) > 1:
        return bc, tl
    if R >= 16:
        new_bc = max(8, _round_up(_round_up(R, 2) // 2, 8))
        if new_bc < R:
            return new_bc, tl
    if tl >= 256:
        new_tl = _round_up(_round_up(tl, 2) // 2, 128)
        if new_tl < L:
            return bc, new_tl
    return bc, tl                                   # tiny tensor: leave as-is


# ----------------------------------------------------------------------------
# Wrapper
# ----------------------------------------------------------------------------
def batchnorm_wrapper_forward(x, gamma, beta, running_mean, running_var,
                              eps=1e-5):
    """Eval-mode BatchNorm2d with fp16/bf16 -> fp32 -> fp16/bf16 round trip.

    x: (N, C, H, W) activations (typically bf16/fp16).
    gamma/beta/running_mean/running_var: (C,) BatchNorm2d parameters/buffers.
    """
    N, C, H, W = x.shape
    HW = H * W

    # Fused per-channel affine (O(C), done once in the wrapper; eps never
    # enters the kernel).
    g = gamma.astype(jnp.float32)
    b = beta.astype(jnp.float32)
    m = running_mean.astype(jnp.float32)
    v = running_var.astype(jnp.float32)
    scale = g * jax.lax.rsqrt(v + jnp.float32(eps))            # (C,)
    shift = b - m * scale                                      # (C,)

    # ---- Block byte budget (same on all gens; sized for v7x's 64 MiB VMEM) ----
    TARGET_BLOCK_BYTES = 4 << 20                               # ~4 MiB / block
    itemsize = jnp.dtype(x.dtype).itemsize
    max_block_elems = max(8 * 128, TARGET_BLOCK_BYTES // itemsize)
    lane_cap = max(128, _round_down(max_block_elems // 8, 128))

    # ---- View / path selection ------------------------------------------------
    if HW >= 128 and HW % 128 == 0:
        # Path A: rows = (n, c), lanes = H*W (already lane-dense).
        R, L = N * C, HW
        x2 = x.reshape(R, L)                                   # free view of NCHW
        scale_p = jnp.broadcast_to(scale[None, :], (N, C)).reshape(R, 1)
        shift_p = jnp.broadcast_to(shift[None, :], (N, C)).reshape(R, 1)
        per_row_params = True
    elif HW < 512:
        # Path B: small / unaligned spatial -> fold C into the lane axis so the
        # output last dim is large and (usually) 128-aligned: no narrow masked
        # stores.  Params become a per-lane row of length C*H*W (tiny).
        R, L = N, C * HW
        x2 = x.reshape(R, L)                                   # free view of NCHW
        scale_p = jnp.repeat(scale, HW).reshape(1, L)
        shift_p = jnp.repeat(shift, HW).reshape(1, L)
        per_row_params = False
        # TODO(synk): if N < 8 a channel-group factor could be folded into rows
        # to fill sublanes; skipped (memory-bound kernel, compute has ~5x slack).
    else:
        # Path A (large, non-128-aligned H*W): 128-multiple lane tiles with a
        # masked ragged tail; never a full-extent 8 x L block that blows VMEM.
        R, L = N * C, HW
        x2 = x.reshape(R, L)
        scale_p = jnp.broadcast_to(scale[None, :], (N, C)).reshape(R, 1)
        shift_p = jnp.broadcast_to(shift[None, :], (N, C)).reshape(R, 1)
        per_row_params = True

    # ---- Tile selection ---------------------------------------------------------
    tl = _pick_lane_tile(L, lane_cap)
    bc = _pick_row_tile(R, max(1, max_block_elems // tl))
    bc, tl = _ensure_multi_step(R, L, bc, tl)                  # v7x megacore

    # Grid order: lane axis innermost -> Path A's (bc, 1) param blocks stay
    # VMEM-resident across the inner j sweep (index_map ignores j).
    grid = (pl.cdiv(R, bc), pl.cdiv(L, tl))

    if per_row_params:
        param_spec = pl.BlockSpec((bc, 1), lambda i, j: (i, 0))
        param_rows, param_cols = R, 1
    else:
        param_spec = pl.BlockSpec((1, tl), lambda i, j: (0, j))
        param_rows, param_cols = 1, L
    assert scale_p.shape == (param_rows, param_cols)

    out = pl.pallas_call(
        _bn_affine_kernel,
        out_shape=jax.ShapeDtypeStruct((R, L), x.dtype),
        grid=grid,
        in_specs=[
            pl.BlockSpec((bc, tl), lambda i, j: (i, j)),
            param_spec,
            param_spec,
        ],
        out_specs=pl.BlockSpec((bc, tl), lambda i, j: (i, j)),
        compiler_params=pltpu.CompilerParams(
            dimension_semantics=("parallel", "parallel"),
            # 48 MiB: well above the ~16-20 MiB double-buffered working set,
            # below v7x's 64 MiB physical VMEM (Mosaic scratch headroom), and
            # overrides v5e's 16 MiB scoped default.
            vmem_limit_bytes=48 << 20,
        ),
    )(x2, scale_p, shift_p)

    return out.reshape(N, C, H, W)                             # free view back


# ----------------------------------------------------------------------------
# Self-test
# ----------------------------------------------------------------------------
def _reference(x, gamma, beta, running_mean, running_var, eps):
    xf = x.astype(jnp.float32)
    sc = gamma / jnp.sqrt(running_var + eps)
    ref = (xf - running_mean[None, :, None, None]) * sc[None, :, None, None] \
        + beta[None, :, None, None]
    return ref.astype(x.dtype)


def _run_case(key, N, C, H, W, dtype):
    kx, km, kv = jax.random.split(key, 3)
    x = jax.random.normal(kx, (N, C, H, W), dtype=jnp.float32).astype(dtype)
    gamma = 1.0 + 0.1 * jnp.arange(C, dtype=jnp.float32)
    beta = 0.05 * jnp.arange(C, dtype=jnp.float32) - 0.1
    running_mean = 0.2 * jax.random.normal(km, (C,), dtype=jnp.float32)
    running_var = 0.5 + jax.random.uniform(kv, (C,), dtype=jnp.float32)
    eps = 1e-5

    y = batchnorm_wrapper_forward(x, gamma, beta, running_mean, running_var, eps)
    y = jax.block_until_ready(y)

    ref = _reference(x, gamma, beta, running_mean, running_var, eps)
    assert y.dtype == x.dtype
    assert y.shape == x.shape
    assert jnp.allclose(y.astype(jnp.float32), ref.astype(jnp.float32),
                        atol=1e-2, rtol=1e-2)


if __name__ == "__main__":
    key = jax.random.PRNGKey(0)
    k0, k1 = jax.random.split(key)

    # Path A: 128-aligned spatial (16x16=256 lanes), bf16 stands in for fp16.
    _run_case(k0, N=2, C=4, H=16, W=16, dtype=jnp.bfloat16)

    # Path B: small / non-128-aligned spatial (7x7=49) -> lane-dense C*H*W view.
    _run_case(k1, N=2, C=8, H=7, W=7, dtype=jnp.bfloat16)

    print("KERNEL_OK")
</pallas_src>

<mosaic_0001>
module attributes {stable_mosaic.version = 11 : i64} {
  func.func @_bn_affine_kernel(%arg0: i32, %arg1: i32, %arg2: memref<8x128xbf16, #tpu.memory_space<vmem>>, %arg3: memref<8x1xf32, #tpu.memory_space<vmem>>, %arg4: memref<8x1xf32, #tpu.memory_space<vmem>>, %arg5: memref<8x128xbf16, #tpu.memory_space<vmem>>) attributes {dimension_semantics = [#tpu.dimension_semantics<parallel>, #tpu.dimension_semantics<parallel>], iteration_bounds = array<i64: 1, 2>, scalar_prefetch = 0 : i64, scratch_operands = 0 : i64, tpu.core_type = #tpu.core_type<tc>, window_params = [{transform_indices = @transform_0, window_bounds = array<i64: 8, 128>}, {transform_indices = @transform_1, window_bounds = array<i64: 8, 1>}, {transform_indices = @transform_2, window_bounds = array<i64: 8, 1>}, {transform_indices = @transform_3, window_bounds = array<i64: 8, 128>}]} {
    %c0 = arith.constant 0 : index
    %c0_0 = arith.constant 0 : index
    %0 = vector.load %arg2[%c0, %c0_0] : memref<8x128xbf16, #tpu.memory_space<vmem>>, vector<8x128xbf16>
    %1 = arith.extf %0 : vector<8x128xbf16> to vector<8x128xf32>
    %c0_1 = arith.constant 0 : index
    %c0_2 = arith.constant 0 : index
    %2 = vector.load %arg3[%c0_1, %c0_2] : memref<8x1xf32, #tpu.memory_space<vmem>>, vector<8x1xf32>
    %3 = vector.broadcast %2 : vector<8x1xf32> to vector<8x128xf32>
    %4 = arith.mulf %1, %3 : vector<8x128xf32>
    %c0_3 = arith.constant 0 : index
    %c0_4 = arith.constant 0 : index
    %5 = vector.load %arg4[%c0_3, %c0_4] : memref<8x1xf32, #tpu.memory_space<vmem>>, vector<8x1xf32>
    %6 = vector.broadcast %5 : vector<8x1xf32> to vector<8x128xf32>
    %7 = arith.addf %4, %6 : vector<8x128xf32>
    %8 = arith.truncf %7 : vector<8x128xf32> to vector<8x128xbf16>
    %c0_5 = arith.constant 0 : index
    %c0_6 = arith.constant 0 : index
    %9 = vector.load %arg5[%c0_5, %c0_6] : memref<8x128xbf16, #tpu.memory_space<vmem>>, vector<8x128xbf16>
    tpu.vector_store %arg5[%c0_5, %c0_6], %8 {strides = array<i32>} : memref<8x128xbf16, #tpu.memory_space<vmem>>, vector<8x128xbf16>,
    return
  }
  func.func @transform_0(%arg0: i32, %arg1: i32) -> (i32, i32) {
    %c0_i32 = arith.constant 0 : i32
    return %arg0, %arg1 : i32, i32
  }
  func.func @transform_1(%arg0: i32, %arg1: i32) -> (i32, i32) {
    %c0_i32 = arith.constant 0 : i32
    %c0_i32_0 = arith.constant 0 : i32
    return %arg0, %c0_i32 : i32, i32
  }
  func.func @transform_2(%arg0: i32, %arg1: i32) -> (i32, i32) {
    %c0_i32 = arith.constant 0 : i32
    %c0_i32_0 = arith.constant 0 : i32
    return %arg0, %c0_i32 : i32, i32
  }
  func.func @transform_3(%arg0: i32, %arg1: i32) -> (i32, i32) {
    %c0_i32 = arith.constant 0 : i32
    return %arg0, %arg1 : i32, i32
  }
}

</mosaic_0001>

<bundles_post_ra>
// kernel: tpu_custom_call.1
= control target key start
LH: loop header
LB: loop body
LE: loop exit
PB: predicated region body
PF: predicated region fallthrough
CT: control target
= control target key end

     0   :  { %8 = vsyncpa [#allocation3], 0  ;;  %s642_s0 = inlined_call_operand.vmem [shape: bf16[8,256], index: 0, kind: input, shape index: {}]   ;;  %s643_s1 = inlined_call_operand.vmem [shape: f32[8,1], index: 1, kind: input, shape index: {}]   ;;  %s644_s2 = inlined_call_operand.vmem [shape: f32[8,1], index: 2, kind: input, shape index: {}]   ;;  %s645_s3 = inlined_call_operand.hbm [shape: bf16[8,256], index: 3, kind: output, shape index: {}]  }
   0x1   :  { %10 = vsyncpa [#allocation3 + $0x1], 0  ;;  %s537_s12 = smov 0   ;;  %s539_s13 = smov 0  }
   0x2   :  { %s541_s14 = smov 0   ;;  %s543_s15 = smov 0  }
   0x3   :  { %s545_s16 = smov 0   ;;  %s547_s17 = smov 0  }
   0x4 LB: > { %s367_s18 = sadd.s32 4294967295, %s513_s17   ;;  %s368_s19 = sadd.s32 4294967294, %s513_s17   ;;  %s513_s17 = sphi %s547_s17, %s16_s17   ;;  %s509_s16 = sphi %s545_s16, %s652_s16   ;;  %s505_s15 = sphi %s543_s15, %s651_s15   ;;  %s501_s14 = sphi %s541_s14, %s650_s14   ;;  %s497_s13 = sphi %s539_s13, %s649_s13   ;;  %s493_s12 = sphi %s537_s12, %s648_s12  }
   0x5   : > { %s25_s20 = sadd.s32 1, %s509_s16  ;;  %s117_s21 = sadd.s32 1, %s501_s14 }
   0x6   : > { %p26_p0 = scmp.ge.s32.totalorder %s25_s20, 2  ;;  %p127_p1 = scmp.ne.s32.totalorder %s501_s14, %s497_s13 }
   0x7   : > { %p128_p2 = scmp.eq.s32.totalorder %s367_s18, 1  ;;  %p133_p3 = scmp.ne.s32.totalorder %s497_s13, %s493_s12 }
   0x8   : > { %s654_s20 = smov (%p26_p0, %s25_s20), 0  ;;  %p134_p5 = scmp.eq.s32.totalorder %s368_s19, 1 }
   0x9   : > { %p577_p4 = por %p128_p2, %p127_p1  ;;  %s113_s23 = ssub.s32 %s509_s16, %s654_s20 }
   0xa   : > { %p373_p6 = scmp.ge.s32.totalorder %s513_s17, 1  ;;  %p115_p7 = scmp.eq.s32.totalorder %s113_s23, 0 }
   0xb   : > { %p584_p8 = por %p134_p5, %p133_p3  ;;  %p177_p9 = scmp.lt.s32.totalorder %s513_s17, 3 }
   0xc   : > { %s590_s25 = scalar_select %p115_p7, %s501_s14, %s117_s21  }
   0xd   : > { %p178_p10 = pnand %p373_p6, %p177_p9 }
   0xe   : > { %p214_p11 = scmp.lt.s32.totalorder (!%p178_p10), %s505_s15, 1  ;;  %s209_s8 = sand.u32 (!%p178_p10), 1, %s497_s13  }
   0xf   : > { %181 = sbr.rel (%p178_p10) target bundleno = 167 (0xa7), region = 32  ;;  %s374_s9 = sshll.u32 (!%p178_p10), %s209_s8, 2 }
  0x10   : > { %s377_s10 = sshll.u32 (!%p178_p10), %s505_s15, 6  ;;  %s211_s11 = scalar_lea.vmem (!%p178_p10), [#allocation2], %s374_s9 }
  0x11   : > { %s262_s18 = sshll.u32 (!%p178_p10), %s211_s11, 4  ;;  %s260_s23 = scalar_lea.hbm (!%p178_p10), %s645_s3, %s377_s10  ;;  %s263_s18 = int_to_ptr.vmem [resolvable:$true] %s262_s18 }
  0x12   : > { %s247_s26 = scalar_lea.sflag (!%p178_p10), [#allocation3], %s209_s8  ;;  %s437_s27 = scalar_lea.vmem (!%p178_p10), %s263_s18, 64 }
  0x13   : > { %p438_p12 = scmp.ne.s32.totalorder (!%p178_p10), %s263_s18, %s437_s27  ;;  %s516_s28 = smov (!%p178_p10), [#allocation2]  }
  0x14   : > { %v230_v0 = vld [vmem:[%s643_s1] sm:$0xff]  ;;  %v515_v1 = vmov 0   ;;  %s215_s30 = scalar_select %p214_p11, %s505_s15, 1 }
  0x15   : > { %436 = vset.pattern.permute.xlu0 %v515_v1  ;;  %v237_v2 = vld [vmem:[%s644_s2] sm:$0xff]  ;;  %p439_p13 = pnand %p438_p12, %p577_p4  ;;  %s441_s29 = sshll.u32 %s516_s28, 4  ;;  %s442_s29 = int_to_ptr.vmem [resolvable:$false] %s441_s29 }
  0x16   : > { %233 = vperm.xlu0 %436, %v230_v0   ;;  %s375_s4 = sshll.u32 %s215_s30, 2  ;;  %s443_s15 = scalar_lea.vmem %s442_s29, 128 }
  0x17   : > { %s219_s7 = scalar_lea.vmem %s642_s0, %s375_s4  ;;  %p440_p0 = pneg %p439_p13 }
  0x18   : > { %v228_v3 = vld [vmem:[%s219_s7] sm:$0xf]  ;;  %p444_p1 = scmp.lt.s32.totalorder %s263_s18, %s442_s29  ;;  %p445_p2 = scmp.lt.s32.totalorder %s443_s15, %s437_s27 }
  0x19   : > { %v229_v4 = vunpack.c.l.bf16 %v228_v3 }
  0x1a   : > { %240 = vperm.xlu0 %436, %v237_v2   ;;  %p446_p3 = por %p445_p2, %p444_p1 }
  0x1c   : > { %p447_p5 = pnand %p446_p3, %p440_p0 }
  0x91   : > { %v234_v5 = vpop.permute.xlu0 %233 }
  0x92   : > { %v236_v6 = vmul.f32 %v234_v5, %v229_v4 }
  0x95   : > { %v241_v7 = vpop.permute.xlu0 %240 }
  0x96   : > { %v243_v8 = vadd.f32 %v241_v7, %v236_v6 }
  0x98   : > { %v244_v9 = vpack.c.bf16 %v243_v8, %v243_v8 }
  0x9a   : > { %245 = vst [vmem:[%s211_s11] sm:$0xf] %v244_v9 }
  0x9b   : > { %450 = shalt.err (!%p447_p5)
}
  0x9c   : > { %s451_s30 = scalar_lea.hbm %s260_s23, 64  ;;  %s455_s6 = scalar_lea.hbm %s645_s3, 128 }
  0x9d   : > { %p452_p6 = scmp.ne.s32.totalorder %s260_s23, %s451_s30  ;;  %p456_p10 = scmp.lt.s32.totalorder %s260_s23, %s645_s3 }
  0x9e   : > { %p457_p11 = scmp.lt.s32.totalorder %s455_s6, %s451_s30 }
  0x9f   : > { %p453_p7 = pnand %p452_p6, %p577_p4 }
  0xa0   : > { %p458_p12 = por %p457_p11, %p456_p10 }
  0xa1   : > { %p454_p9 = pneg %p453_p7 }
  0xa3   : > { %p459_p13 = pnand %p458_p12, %p454_p9 }
  0xa5   : > { %462 = shalt.err (!%p459_p13)
}
  0xa6   : > { %380 = dma.vmem_to_hbm [thread:$0]  (%p577_p4), %s263_s18, 64, %s260_s23, %s247_s26  }
  0xa7 PF: > { %p386_p0 = scmp.ge.s32.totalorder %s513_s17, 2  ;;  %s274_s9 = sand.u32 1, %s493_s12  }
  0xa8   : > { %s275_s10 = scalar_lea.sflag [#allocation3], %s274_s9 }
  0xa9   : > { %p383_p1 = pnand %p386_p0, %p584_p8 }
  0xab   : > { %p384_p2 = pneg %p383_p1 }
  0xad   : > { %488 = dma.done.wait (%p384_p2), %s275_s10, 64  }
  0xae   : > { %490 = vsyncadd (%p384_p2), %s275_s10, 4294967232  ;;  %s16_s17 = sadd.s32 1, %s513_s17   ;;  %s648_s12 = smov %s497_s13 }
  0xaf   : > { %p13_p3 = scmp.ge.s32.totalorder %s16_s17, 4   ;;  %s649_s13 = smov %s501_s14 }
  0xb0   : > { %s650_s14 = smov %s590_s25  ;;  %s651_s15 = smov %s509_s16 }
  0xb1   : > { %s652_s16 = smov %s654_s20  ;;  %15 = sbr.rel (!%p13_p3) target bundleno = 4 (0x4), region = 73 }
  0xb6   :  { %280 = vsyncpa [#allocation3], 1 }
  0xb7   :  { %282 = vsyncpa [#allocation3 + $0x1], 1 }

</bundles_post_ra>
